<compile_context>
chip_gen: v6e
topology: v6e:2x2x1
jax: 0.10.0
libtpu: 0.0.40
codegen_flags: <defaults>
</compile_context>

<pallas_src>
import jax
import jax.numpy as jnp
from jax.experimental import pallas as pl
from jax.experimental.pallas import tpu as pltpu


def _round_up(x, m):
    return (x + m - 1) // m * m


def _emotion_classifier_kernel(x_ref, w_ref, b_ref, o_ref):
    # x_ref: (TMg, G*D) lane-dense folded input rows
    # w_ref: (G*D, G*C) block-diagonal kron(I_G, W^T), VMEM-resident
    # b_ref: (1, G*C)   tiled bias, VMEM-resident
    # o_ref: (TMg, G*C)
    logits = jnp.dot(x_ref[...], w_ref[...], preferred_element_type=jnp.float32)
    logits = logits + b_ref[...]
    # TODO(synk): nn.Dropout is identity in eval mode; training-mode dropout
    # (pltpu.prng_seed + pltpu.stateful_bernoulli + 1/(1-p) scaling) would need
    # an explicit mode flag and is intentionally not emitted here.
    o_ref[...] = jax.nn.sigmoid(logits).astype(o_ref.dtype)


def emotion_classifier_forward(seq_input, weight, bias):
    """Forward of EmotionClassifier (Linear -> Dropout(eval) -> Sigmoid).

    seq_input: (B, S, D) float32
    weight:    (C, D)    float32 (PyTorch nn.Linear layout)
    bias:      (C,)      float32
    returns:   (B, S, C) float32
    """
    B, S, D = seq_input.shape
    C = weight.shape[0]
    M = B * S

    # Fold G consecutive rows into one lane-dense row of width G*D (= 128 lanes
    # for D=32).  Fall back to G=1 (original layout) if the fold is impossible,
    # so no pad copy of x is ever materialized.
    if D <= 128 and 128 % D == 0 and M % (128 // D) == 0:
        G = 128 // D
    else:
        G = 1

    mg = M // G
    fold_d = G * D
    fold_c = G * C

    # Contiguous reshape -> no HBM copy of x.
    x2d = seq_input.reshape(mg, fold_d)
    # Block-diagonal weight kron(I_G, W^T) built once in the wrapper (tiny).
    w_blk = jnp.kron(jnp.eye(G, dtype=weight.dtype), weight.T)
    b_blk = jnp.tile(bias, G).reshape(1, fold_c)

    # Tile the folded-row axis: target ~2 MiB of x per grid step, keep >= ~8
    # grid steps when M is large (megacore on v7x), multiple-of-8 sublanes.
    row_bytes = fold_d * x2d.dtype.itemsize
    target = max(8, ((2 * 1024 * 1024) // row_bytes) // 8 * 8)
    tmg = max(512, min(target, _round_up(pl.cdiv(mg, 8), 8)))
    tmg = min(tmg, mg)  # if tmg == mg the block equals the full array dim
    grid = pl.cdiv(mg, tmg)

    out2d = pl.pallas_call(
        _emotion_classifier_kernel,
        out_shape=jax.ShapeDtypeStruct((mg, fold_c), jnp.float32),
        grid_spec=pltpu.PrefetchScalarGridSpec(
            num_scalar_prefetch=0,
            grid=(grid,),
            in_specs=[
                # Streaming lane-dense x tiles (default double-buffering; extra
                # buffers would only raise VMEM pressure on this mem-bound op).
                pl.BlockSpec((tmg, fold_d), lambda i: (i, 0)),
                # Weight / bias: constant block index -> stay VMEM-resident.
                pl.BlockSpec((fold_d, fold_c), lambda i: (0, 0)),
                pl.BlockSpec((1, fold_c), lambda i: (0, 0)),
            ],
            out_specs=pl.BlockSpec((tmg, fold_c), lambda i: (i, 0)),
        ),
        compiler_params=pltpu.CompilerParams(
            dimension_semantics=("parallel",)),
    )(x2d, w_blk, b_blk)

    # (mg, G*C) -> (M, C) -> (B, S, C): contiguous reshapes, no copies.
    return out2d.reshape(M, C).reshape(B, S, C)


if __name__ == "__main__":
    # Small shapes consistent with the module's forward.
    batch, seq, input_dims, num_classes = 2, 8, 32, 4

    key = jax.random.PRNGKey(0)
    k_x, k_w, k_b = jax.random.split(key, 3)

    seq_input = jax.random.normal(k_x, (batch, seq, input_dims), dtype=jnp.float32)
    # Deterministic parameter init mimicking nn.Linear's uniform(-1/sqrt(D), 1/sqrt(D)).
    bound = 1.0 / jnp.sqrt(jnp.float32(input_dims))
    weight = jax.random.uniform(k_w, (num_classes, input_dims),
                                minval=-bound, maxval=bound, dtype=jnp.float32)
    bias = jax.random.uniform(k_b, (num_classes,),
                              minval=-bound, maxval=bound, dtype=jnp.float32)

    out = emotion_classifier_forward(seq_input, weight, bias)
    out = jax.block_until_ready(out)

    # Sanity check vs. plain JAX reference (eval-mode dropout == identity).
    ref = jax.nn.sigmoid(seq_input @ weight.T + bias)
    assert out.shape == (batch, seq, num_classes)
    assert jnp.allclose(out, ref, atol=1e-5, rtol=1e-5)
    print("KERNEL_OK")
</pallas_src>

<mosaic_0001>
module attributes {stable_mosaic.version = 11 : i64} {
  func.func @_emotion_classifier_kernel(%arg0: i32, %arg1: memref<4x128xf32, #tpu.memory_space<vmem>>, %arg2: memref<128x16xf32, #tpu.memory_space<vmem>>, %arg3: memref<1x16xf32, #tpu.memory_space<vmem>>, %arg4: memref<4x16xf32, #tpu.memory_space<vmem>>) attributes {dimension_semantics = [#tpu.dimension_semantics<parallel>], iteration_bounds = array<i64: 1>, scalar_prefetch = 0 : i64, scratch_operands = 0 : i64, tpu.core_type = #tpu.core_type<tc>, window_params = [{transform_indices = @transform_0, window_bounds = array<i64: 4, 128>}, {pipeline_mode = #tpu.pipeline_mode<synchronous>, transform_indices = @transform_1, window_bounds = array<i64: 128, 16>}, {pipeline_mode = #tpu.pipeline_mode<synchronous>, transform_indices = @transform_2, window_bounds = array<i64: 1, 16>}, {transform_indices = @transform_3, window_bounds = array<i64: 4, 16>}]} {
    %c0 = arith.constant 0 : index
    %c0_0 = arith.constant 0 : index
    %0 = vector.load %arg1[%c0, %c0_0] : memref<4x128xf32, #tpu.memory_space<vmem>>, vector<4x128xf32>
    %c0_1 = arith.constant 0 : index
    %c0_2 = arith.constant 0 : index
    %1 = vector.load %arg2[%c0_1, %c0_2] : memref<128x16xf32, #tpu.memory_space<vmem>>, vector<128x16xf32>
    %cst = arith.constant dense<0.000000e+00> : vector<4x16xf32>
    %2 = tpu.matmul %0, %1, %cst {dimension_numbers = #tpu.dot_dimension_numbers<[1], [0], [0], [1], [0, 0, 1, 1], [], []>} : vector<4x128xf32>, vector<128x16xf32>, vector<4x16xf32> -> vector<4x16xf32>
    %c0_3 = arith.constant 0 : index
    %c0_4 = arith.constant 0 : index
    %3 = vector.load %arg3[%c0_3, %c0_4] : memref<1x16xf32, #tpu.memory_space<vmem>>, vector<1x16xf32>
    %4 = vector.broadcast %3 : vector<1x16xf32> to vector<4x16xf32>
    %5 = arith.addf %2, %4 : vector<4x16xf32>
    %6 = arith.negf %5 : vector<4x16xf32>
    %7 = math.exp %6 : vector<4x16xf32>
    %cst_5 = arith.constant 1.000000e+00 : f32
    %8 = vector.broadcast %cst_5 : f32 to vector<4x16xf32>
    %9 = arith.addf %8, %7 : vector<4x16xf32>
    %10 = arith.divf %8, %9 : vector<4x16xf32>
    %c0_6 = arith.constant 0 : index
    %c0_7 = arith.constant 0 : index
    %11 = vector.load %arg4[%c0_6, %c0_7] : memref<4x16xf32, #tpu.memory_space<vmem>>, vector<4x16xf32>
    tpu.vector_store %arg4[%c0_6, %c0_7], %10 {strides = array<i32>} : memref<4x16xf32, #tpu.memory_space<vmem>>, vector<4x16xf32>,
    return
  }
  func.func @transform_0(%arg0: i32) -> (i32, i32) {
    %c0_i32 = arith.constant 0 : i32
    %c0_i32_0 = arith.constant 0 : i32
    return %arg0, %c0_i32 : i32, i32
  }
  func.func @transform_1(%arg0: i32) -> (i32, i32) {
    %c0_i32 = arith.constant 0 : i32
    %c0_i32_0 = arith.constant 0 : i32
    %c0_i32_1 = arith.constant 0 : i32
    return %c0_i32, %c0_i32_0 : i32, i32
  }
  func.func @transform_2(%arg0: i32) -> (i32, i32) {
    %c0_i32 = arith.constant 0 : i32
    %c0_i32_0 = arith.constant 0 : i32
    %c0_i32_1 = arith.constant 0 : i32
    return %c0_i32, %c0_i32_0 : i32, i32
  }
  func.func @transform_3(%arg0: i32) -> (i32, i32) {
    %c0_i32 = arith.constant 0 : i32
    %c0_i32_0 = arith.constant 0 : i32
    return %arg0, %c0_i32 : i32, i32
  }
}

</mosaic_0001>

<bundles_post_ra>
// kernel: tpu_custom_call.1
= control target key start
LH: loop header
LB: loop body
LE: loop exit
PB: predicated region body
PF: predicated region fallthrough
CT: control target
= control target key end

     0   :  { %v214_v1 = vmov 0.0   ;;  %vm215_vm0 = vmmov 0   ;;  %s294_s0 = inlined_call_operand.vmem [shape: f32[4,128], index: 0, kind: input, shape index: {}]   ;;  %s295_s1 = inlined_call_operand.vmem [shape: f32[128,16], index: 1, kind: input, shape index: {}]   ;;  %s296_s2 = inlined_call_operand.vmem [shape: f32[1,16], index: 2, kind: input, shape index: {}]   ;;  %s297_s3 = inlined_call_operand.hbm [shape: f32[4,16], index: 3, kind: output, shape index: {}]  }
   0x1   :  { %v31_v0 = vld [vmem:[%s295_s1 + $0x78] sm:$0xff]  ;;  %150 = vmatprep.subr.mxu0 %v214_v1  ;;  %v30_v2 = vld [vmem:[%s295_s1 + $0x70] sm:$0xff]  ;;  %182 = vmatprep.mubr.msk.f32.mxu0 %vm215_vm0, %v214_v1  ;;  %v29_v3 = vld [vmem:[%s295_s1 + $0x68] sm:$0xff] }
   0x2   :  { %151 = vmatpush3.msra.mxu0 %v31_v0  ;;  %v28_v4 = vld [vmem:[%s295_s1 + $0x60] sm:$0xff] }
   0x3   :  { %152 = vmatprep.subr.mxu0 %v214_v1 }
   0x4   :  { %153 = vmatpush3.msra.mxu0 %v30_v2 }
   0x5   :  { %154 = vmatprep.subr.mxu0 %v214_v1 }
   0x6   :  { %155 = vmatpush3.msra.mxu0 %v29_v3 }
   0x7   :  { %8 = vsyncpa [#allocation3], 0  ;;  %156 = vmatprep.subr.mxu0 %v214_v1  ;;  %v27_v5 = vld [vmem:[%s295_s1 + $0x58] sm:$0xff]  ;;  %v26_v6 = vld [vmem:[%s295_s1 + $0x50] sm:$0xff]  ;;  %vm115_vm1 = vcmask 125952  }
   0x8   :  { %157 = vmatpush3.msra.mxu0 %v28_v4  ;;  %v25_v7 = vld [vmem:[%s295_s1 + $0x48] sm:$0xff]  ;;  %v24_v8 = vld [vmem:[%s295_s1 + $0x40] sm:$0xff]  ;;  %v23_v9 = vld [vmem:[%s295_s1 + $0x38] sm:$0xff] }
   0x9   :  { %158 = vmatprep.subr.mxu0 %v214_v1  ;;  %v22_v10 = vld [vmem:[%s295_s1 + $0x30] sm:$0xff]  ;;  %v21_v11 = vld [vmem:[%s295_s1 + $0x28] sm:$0xff]  ;;  %v20_v12 = vld [vmem:[%s295_s1 + $0x20] sm:$0xff] }
   0xa   :  { %159 = vmatpush3.msra.mxu0 %v27_v5  ;;  %v19_v13 = vld [vmem:[%s295_s1 + $0x18] sm:$0xff]  ;;  %v18_v14 = vld [vmem:[%s295_s1 + $0x10] sm:$0xff]  ;;  %v17_v15 = vld [vmem:[%s295_s1 + $0x8] sm:$0xff] }
   0xb   :  { %160 = vmatprep.subr.mxu0 %v214_v1  ;;  %v16_v16 = vld [vmem:[%s295_s1] sm:$0xff]  ;;  %s216_s1 = smov [#allocation2]  }
   0xc   :  { %161 = vmatpush3.msra.mxu0 %v26_v6  ;;  %v15_v17 = vld [vmem:[%s294_s0] sm:$0xf]  ;;  %s123_s21 = sshll.u32 %s216_s1, 4  ;;  %s124_s21 = int_to_ptr.vmem [resolvable:$true] %s123_s21 }
   0xd   :  { %162 = vmatprep.subr.mxu0 %v214_v1  ;;  %v131_v18 = vld [vmem:[%s296_s2] ss:$0 sm:$0xff]  ;;  %s192_s0 = scalar_lea.vmem %s124_s21, 64  ;;  %p197_p1 = scmp.lt.s32.totalorder %s124_s21, %s124_s21 }
   0xe   :  { %163 = vmatpush3.msra.mxu0 %v25_v7  ;;  %p193_p0 = scmp.ne.s32.totalorder %s124_s21, %s192_s0  ;;  %p198_p2 = scmp.lt.s32.totalorder %s192_s0, %s192_s0 }
   0xf   :  { %164 = vmatprep.subr.mxu0 %v214_v1 }
  0x10   :  { %165 = vmatpush3.msra.mxu0 %v24_v8  ;;  %p199_p3 = por %p198_p2, %p197_p1 }
  0x11   :  { %166 = vmatprep.subr.mxu0 %v214_v1 }
  0x12   :  { %167 = vmatpush3.msra.mxu0 %v23_v9  ;;  %p200_p4 = pnand %p199_p3, %p193_p0 }
  0x13   :  { %168 = vmatprep.subr.mxu0 %v214_v1 }
  0x14   :  { %169 = vmatpush3.msra.mxu0 %v22_v10 }
  0x15   :  { %170 = vmatprep.subr.mxu0 %v214_v1 }
  0x16   :  { %171 = vmatpush3.msra.mxu0 %v21_v11 }
  0x17   :  { %172 = vmatprep.subr.mxu0 %v214_v1 }
  0x18   :  { %173 = vmatpush3.msra.mxu0 %v20_v12 }
  0x19   :  { %174 = vmatprep.subr.mxu0 %v214_v1 }
  0x1a   :  { %175 = vmatpush3.msra.mxu0 %v19_v13 }
  0x1b   :  { %176 = vmatprep.subr.mxu0 %v214_v1 }
  0x1c   :  { %177 = vmatpush3.msra.mxu0 %v18_v14 }
  0x1d   :  { %178 = vmatprep.subr.mxu0 %v214_v1 }
  0x1e   :  { %179 = vmatpush3.msra.mxu0 %v17_v15 }
  0x1f   :  { %180 = vmatprep.subr.mxu0 %v214_v1 }
  0x20   :  { %181 = vmatpush3.msra.mxu0 %v16_v16 }
  0x21   :  { %183 = vmatmul.mubr.f32.vlgmr.msra.gmra.mxu0 %v15_v17 }
  0xe1   :  { %v105_v19 = vpop.f32.mrf.mxu0 }
  0xe2   :  { %v106_v20 = vadd.f32 %v131_v18, %v105_v19 }
  0xe3   :  { %v184_v21 = vpop.f32.mrf.mxu0 }
  0xe4   :  { %v132_v22 = vmul.f32 -1.442695, %v106_v20 }
  0xe6   :  { %188 = vpow2.f32 %v132_v22 }
  0xf3   :  { %v189_v23 = vpop.eup %188 }
  0xf4   :  { %v112_v24 = vadd.f32 1.0, %v189_v23 }
  0xf6   :  { %190 = vrcp.f32 %v112_v24 }
 0x103   :  { %v191_v25 = vpop.eup %190 }
 0x104   :  { %116 = vst.msk [vmem:[#allocation2] sm:$0xf] %vm115_vm1, %v191_v25 }
 0x105   :  { %203 = shalt.err (!%p200_p4)
}
 0x106   :  { %126 = dma.vmem_to_hbm [thread:$0]  %s124_s21, 64, %s297_s3, [#allocation3]  }
 0x107   :  { %212 = dma.done.wait [#allocation3], 64  }
 0x108   :  { %213 = vsyncadd [#allocation3], 4294967232 }
 0x109   :  { %130 = vsyncpa [#allocation3], 1 }

</bundles_post_ra>
